<compile_context>
chip_gen: v6e
topology: v6e:2x2x1
jax: 0.10.0
libtpu: 0.0.40
codegen_flags: <defaults>
</compile_context>

<pallas_src>
import functools

import jax
import jax.numpy as jnp
from jax import lax
from jax.experimental import pallas as pl
from jax.experimental.pallas import tpu as pltpu

LANE = 128
DEFAULT_TILE_ROWS = 8192      # 8192 * 128 * 4 B = 4 MiB per f32 input block
CHUNK_ROWS = 256              # in-kernel compute granularity (temps ~128 KiB)
VMEM_LIMIT_BYTES = 32 * 1024 * 1024   # 2 inputs x 2 bufs x 4 MiB = 16 MiB + headroom

_NATIVE_DTYPES = (jnp.float32, jnp.bfloat16)   # kept native in HBM, upcast in-kernel


def _round_up(x, m):
    return ((x + m - 1) // m) * m


def _device_kind():
    try:
        return jax.devices()[0].device_kind.lower()
    except Exception:
        return ""


def _num_tensorcores():
    kind = _device_kind()
    # v7x has 2 TensorCores per device; v4/v5p expose a 2-TC megacore.
    # v2/v3/v5e/v6e: single TensorCore per device.
    if any(tag in kind for tag in ("v7", "7x", "v4", "v5p")):
        return 2
    return 1


def _dim_semantics_multicore():
    kind = _device_kind()
    if ("v7" in kind or "7x" in kind) and hasattr(pltpu, "CORE_PARALLEL"):
        # Review feedback: plain "parallel" may not actually shard across the
        # two v7x TensorCores; CORE_PARALLEL forces the per-core split.
        return (pltpu.CORE_PARALLEL, pltpu.ARBITRARY)
    return ("parallel", "arbitrary")


def _tm_mse_kernel(im_ref, ref_ref, out_ref, *, rows, tile_rows, chunk_rows,
                   tiles_per_core, first_masked_tile, need_mask, multi_core):
    if multi_core:
        i = pl.program_id(1)
        global_tile = pl.program_id(0) * tiles_per_core + i
    else:
        i = pl.program_id(0)
        global_tile = i

    @pl.when(i == 0)
    def _():
        out_ref[...] = jnp.zeros_like(out_ref)

    num_chunks = tile_rows // chunk_rows
    base_row = global_tile * tile_rows

    def chunk_partial(c, masked):
        off = pl.multiple_of(c * chunk_rows, chunk_rows)
        im = im_ref[pl.ds(off, chunk_rows), :].astype(jnp.float32)
        rf = ref_ref[pl.ds(off, chunk_rows), :].astype(jnp.float32)
        im = jnp.maximum(im, 0.0)
        rf = jnp.maximum(rf, 0.0)
        # tonemap(im) - tonemap(ref) == (im - ref) / ((1 + im) * (1 + ref)):
        # a single EUP reciprocal (free slot) instead of divides on the VALU.
        d = (im - rf) * pl.reciprocal((1.0 + im) * (1.0 + rf), approx=True)
        sq = d * d
        if masked:
            # Zero rows past the true row count: partial last block and
            # clamped re-reads by over-covering grid steps.  The select also
            # squashes any NaN/Inf living in the unspecified partial region.
            row = base_row + off + lax.broadcasted_iota(
                jnp.int32, (chunk_rows, LANE), 0)
            sq = jnp.where(row < rows, sq, 0.0)
        # Fold (chunk_rows, 128) -> (8, 128): pure VPU adds, no cross-lane work.
        return sq.reshape(chunk_rows // 8, 8, LANE).sum(axis=0)

    def accumulate(masked):
        acc = lax.fori_loop(
            0, num_chunks,
            lambda c, a: a + chunk_partial(c, masked),
            jnp.zeros((8, LANE), jnp.float32),
            unroll=min(8, num_chunks))
        out_ref[...] += acc

    if need_mask:
        @pl.when(global_tile >= first_masked_tile)
        def _():
            accumulate(True)

        @pl.when(global_tile < first_masked_tile)
        def _():
            accumulate(False)
    else:
        accumulate(False)


def _aligned_sum(im2, ref2, rows):
    """Sum of squared tonemap differences over a lane-aligned (rows, 128) slab."""
    chunk_rows = min(CHUNK_ROWS, _round_up(rows, 16))         # 16 keeps bf16 tiling legal
    tile_rows = min(DEFAULT_TILE_ROWS, _round_up(rows, chunk_rows))
    num_tiles = pl.cdiv(rows, tile_rows)

    num_cores = min(_num_tensorcores(), num_tiles)
    multi_core = num_cores > 1

    if multi_core:
        tiles_per_core = pl.cdiv(num_tiles, num_cores)
        covered_rows = num_cores * tiles_per_core * tile_rows
        grid = (num_cores, tiles_per_core)

        def in_index_map(c, i):
            # Over-covering steps re-read the last valid block (clamped); their
            # contribution is fully masked to zero inside the kernel.
            return (jnp.minimum(c * tiles_per_core + i, num_tiles - 1), 0)

        out_spec = pl.BlockSpec((8, LANE), lambda c, i: (c, 0))
        out_rows = num_cores * 8
        dim_sem = _dim_semantics_multicore()
    else:
        tiles_per_core = num_tiles
        covered_rows = num_tiles * tile_rows
        grid = (num_tiles,)
        in_index_map = lambda i: (i, 0)
        out_spec = pl.BlockSpec((8, LANE), lambda i: (0, 0))
        out_rows = 8
        dim_sem = ("arbitrary",)

    need_mask = covered_rows != rows
    first_masked_tile = num_tiles - 1 if rows % tile_rows else num_tiles

    kernel = functools.partial(
        _tm_mse_kernel,
        rows=rows, tile_rows=tile_rows, chunk_rows=chunk_rows,
        tiles_per_core=tiles_per_core, first_masked_tile=first_masked_tile,
        need_mask=need_mask, multi_core=multi_core)

    partials = pl.pallas_call(
        kernel,
        out_shape=jax.ShapeDtypeStruct((out_rows, LANE), jnp.float32),
        grid_spec=pltpu.PrefetchScalarGridSpec(
            num_scalar_prefetch=0,
            grid=grid,
            in_specs=[
                pl.BlockSpec((tile_rows, LANE), in_index_map),
                pl.BlockSpec((tile_rows, LANE), in_index_map),
            ],
            out_specs=out_spec,
        ),
        compiler_params=pltpu.CompilerParams(
            dimension_semantics=dim_sem,
            vmem_limit_bytes=VMEM_LIMIT_BYTES,
        ),
    )(im2, ref2)

    # Tiny final cross-lane reduce in plain JAX.
    return jnp.sum(partials)


def _tonemap_jnp(x):
    x = jnp.maximum(x, 0.0)
    return x / (1.0 + x)


def tonemapped_mse(im, ref, eps=0.01):
    """Pallas TPU implementation of TonemappedMSE.forward.

    Note: `eps` is stored by the PyTorch module but never used in forward();
    kept only for signature parity.
    """
    del eps
    assert im.shape == ref.shape, (im.shape, ref.shape)
    n = int(im.size)
    if n == 0:
        return jnp.float32(jnp.nan)   # torch.mean over empty -> nan

    def prep(x):
        x = x.reshape(-1)                       # free (contiguous) reshape
        if x.dtype not in _NATIVE_DTYPES:       # keep f32/bf16 native in HBM
            x = x.astype(jnp.float32)
        return x

    im_flat, ref_flat = prep(im), prep(ref)

    rem = n % LANE
    n_main = n - rem

    total = jnp.float32(0.0)
    if rem:
        # Ragged tail (< 128 elements): tiny, handled in plain JAX so we never
        # jnp.pad (full-array copy of BOTH inputs) just to append <=127 zeros.
        im_t = lax.slice(im_flat, (n_main,), (n,)).astype(jnp.float32)
        rf_t = lax.slice(ref_flat, (n_main,), (n,)).astype(jnp.float32)
        dt = _tonemap_jnp(im_t) - _tonemap_jnp(rf_t)
        total = total + jnp.sum(dt * dt)

    if n_main:
        if rem:
            # TODO(synk): this prefix slice still copies ~n elements per input;
            # a fully copy-free ragged path needs 1-D blocks / pl.BoundedSlice.
            im_main = lax.slice(im_flat, (0,), (n_main,))
            ref_main = lax.slice(ref_flat, (0,), (n_main,))
        else:
            im_main, ref_main = im_flat, ref_flat   # zero-copy fast path
        rows = n_main // LANE
        total = total + _aligned_sum(im_main.reshape(rows, LANE),
                                     ref_main.reshape(rows, LANE), rows)

    return 0.5 * total / n


def _reference(im, ref):
    im32 = im.astype(jnp.float32)
    rf32 = ref.astype(jnp.float32)
    d = _tonemap_jnp(im32) - _tonemap_jnp(rf32)
    return 0.5 * jnp.mean(d * d)


if __name__ == "__main__":
    key = jax.random.PRNGKey(0)

    def make_pair(k, shape, dtype=jnp.float32):
        k_im, k_ref = jax.random.split(k)
        im = (jax.random.normal(k_im, shape, dtype=jnp.float32) * 2.0 + 0.5).astype(dtype)
        ref = (jax.random.normal(k_ref, shape, dtype=jnp.float32) * 2.0 + 0.5).astype(dtype)
        return im, ref

    # Primary small NCHW example (what the PyTorch module would see).
    im, ref = make_pair(key, (2, 4, 16, 16))
    loss = jax.block_until_ready(tonemapped_mse(im, ref))
    expected = jax.block_until_ready(_reference(im, ref))
    assert jnp.allclose(loss, expected, rtol=2e-3, atol=1e-6), (loss, expected)

    # Extra coverage:
    #  * element count not a multiple of 128 (ragged-tail path + in-kernel mask)
    #  * multi-tile f32 case (grid loop, accumulator across steps)
    #  * bf16 inputs kept native in HBM and upcast in-kernel
    cases = [((2, 3, 17, 19), jnp.float32),
             ((4, 8, 256, 256), jnp.float32),
             ((2, 4, 192, 192), jnp.bfloat16)]
    for idx, (shape, dtype) in enumerate(cases):
        im_i, ref_i = make_pair(jax.random.fold_in(key, idx + 1), shape, dtype)
        loss_i = jax.block_until_ready(tonemapped_mse(im_i, ref_i))
        exp_i = jax.block_until_ready(_reference(im_i, ref_i))
        assert jnp.allclose(loss_i, exp_i, rtol=2e-3, atol=1e-6), (shape, loss_i, exp_i)

    print("KERNEL_OK")
</pallas_src>

<mosaic_0001>
module attributes {stable_mosaic.version = 11 : i64} {
  func.func @_tm_mse_kernel(%arg0: i32, %arg1: memref<16x128xf32, #tpu.memory_space<vmem>>, %arg2: memref<16x128xf32, #tpu.memory_space<vmem>>, %arg3: memref<8x128xf32, #tpu.memory_space<vmem>>) attributes {dimension_semantics = [#tpu.dimension_semantics<arbitrary>], iteration_bounds = array<i64: 1>, scalar_prefetch = 0 : i64, scratch_operands = 0 : i64, tpu.core_type = #tpu.core_type<tc>, window_params = [{transform_indices = @transform_0, window_bounds = array<i64: 16, 128>}, {transform_indices = @transform_1, window_bounds = array<i64: 16, 128>}, {pipeline_mode = #tpu.pipeline_mode<synchronous>, transform_indices = @transform_2, window_bounds = array<i64: 8, 128>}]} {
    %c0_i32 = arith.constant 0 : i32
    %0 = arith.cmpi eq, %arg0, %c0_i32 : i32
    %1 = arith.extui %0 : i1 to i32
    %c0_i32_0 = arith.constant 0 : i32
    %2 = arith.cmpi ne, %1, %c0_i32_0 : i32
    scf.if %2 {
      %cst_12 = arith.constant 0.000000e+00 : f32
      %29 = vector.broadcast %cst_12 : f32 to vector<8x128xf32>
      %c0_13 = arith.constant 0 : index
      %c0_14 = arith.constant 0 : index
      %30 = vector.load %arg3[%c0_13, %c0_14] : memref<8x128xf32, #tpu.memory_space<vmem>>, vector<8x128xf32>
      tpu.vector_store %arg3[%c0_13, %c0_14], %29 {strides = array<i32>} : memref<8x128xf32, #tpu.memory_space<vmem>>, vector<8x128xf32>,
    } else {
    }
    %cst = arith.constant 0.000000e+00 : f32
    %3 = vector.broadcast %cst : f32 to vector<8x128xf32>
    %c0_i32_1 = arith.constant 0 : i32
    %c16_i32 = arith.constant 16 : i32
    %4 = arith.muli %c0_i32_1, %c16_i32 : i32
    %5 = tpu.assume_multiple %4, 16 : i32
    %6 = arith.index_cast %5 : i32 to index
    %c0 = arith.constant 0 : index
    %7 = vector.load %arg1[%6, %c0] : memref<16x128xf32, #tpu.memory_space<vmem>>, vector<16x128xf32>
    %8 = arith.index_cast %5 : i32 to index
    %c0_2 = arith.constant 0 : index
    %9 = vector.load %arg2[%8, %c0_2] : memref<16x128xf32, #tpu.memory_space<vmem>>, vector<16x128xf32>
    %cst_3 = arith.constant 0.000000e+00 : f32
    %10 = vector.broadcast %cst_3 : f32 to vector<16x128xf32>
    %11 = arith.maximumf %7, %10 : vector<16x128xf32>
    %cst_4 = arith.constant 0.000000e+00 : f32
    %12 = vector.broadcast %cst_4 : f32 to vector<16x128xf32>
    %13 = arith.maximumf %9, %12 : vector<16x128xf32>
    %14 = arith.subf %11, %13 : vector<16x128xf32>
    %cst_5 = arith.constant 1.000000e+00 : f32
    %15 = vector.broadcast %cst_5 : f32 to vector<16x128xf32>
    %16 = arith.addf %15, %11 : vector<16x128xf32>
    %cst_6 = arith.constant 1.000000e+00 : f32
    %17 = vector.broadcast %cst_6 : f32 to vector<16x128xf32>
    %18 = arith.addf %17, %13 : vector<16x128xf32>
    %19 = arith.mulf %16, %18 : vector<16x128xf32>
    %20 = tpu.reciprocal %19 {approx = true} : vector<16x128xf32> -> vector<16x128xf32>
    %21 = arith.mulf %14, %20 : vector<16x128xf32>
    %22 = arith.mulf %21, %21 : vector<16x128xf32>
    %23 = vector.shape_cast %22 : vector<16x128xf32> to vector<2x8x128xf32>
    %cst_7 = arith.constant dense<0.000000e+00> : vector<8x128xf32>
    %24 = vector.multi_reduction <add>, %23, %cst_7 [0] : vector<2x8x128xf32> to vector<8x128xf32>
    %25 = arith.addf %3, %24 : vector<8x128xf32>
    %c1_i32 = arith.constant 1 : i32
    %c0_8 = arith.constant 0 : index
    %c0_9 = arith.constant 0 : index
    %26 = vector.load %arg3[%c0_8, %c0_9] : memref<8x128xf32, #tpu.memory_space<vmem>>, vector<8x128xf32>
    %27 = arith.addf %26, %25 : vector<8x128xf32>
    %c0_10 = arith.constant 0 : index
    %c0_11 = arith.constant 0 : index
    %28 = vector.load %arg3[%c0_10, %c0_11] : memref<8x128xf32, #tpu.memory_space<vmem>>, vector<8x128xf32>
    tpu.vector_store %arg3[%c0_10, %c0_11], %27 {strides = array<i32>} : memref<8x128xf32, #tpu.memory_space<vmem>>, vector<8x128xf32>,
    return
  }
  func.func @transform_0(%arg0: i32) -> (i32, i32) {
    %c0_i32 = arith.constant 0 : i32
    %c0_i32_0 = arith.constant 0 : i32
    return %arg0, %c0_i32 : i32, i32
  }
  func.func @transform_1(%arg0: i32) -> (i32, i32) {
    %c0_i32 = arith.constant 0 : i32
    %c0_i32_0 = arith.constant 0 : i32
    return %arg0, %c0_i32 : i32, i32
  }
  func.func @transform_2(%arg0: i32) -> (i32, i32) {
    %c0_i32 = arith.constant 0 : i32
    %c0_i32_0 = arith.constant 0 : i32
    %c0_i32_1 = arith.constant 0 : i32
    return %c0_i32, %c0_i32_0 : i32, i32
  }
}

</mosaic_0001>

<bundles_post_ra>
// kernel: tpu_custom_call.1
= control target key start
LH: loop header
LB: loop body
LE: loop exit
PB: predicated region body
PF: predicated region fallthrough
CT: control target
= control target key end

     0   :  { %7 = vsyncpa [#allocation3], 0  ;;  %s193_s0 = inlined_call_operand.hbm [shape: f32[16,128], index: 0, kind: input, shape index: {}]   ;;  %s194_s1 = inlined_call_operand.hbm [shape: f32[16,128], index: 1, kind: input, shape index: {}]   ;;  %s195_s2 = inlined_call_operand.hbm [shape: f32[8,128], index: 2, kind: output, shape index: {}]  }
   0x1   :  { %8 = vsyncpa [#allocation6], 0 }
   0x2   :  { %9 = vsyncpa [#allocation4], 0  ;;  %s164_s9 = smov [#allocation2]  }
   0x3   :  { %s15_s10 = sshll.u32 %s164_s9, 4  ;;  %s16_s10 = int_to_ptr.vmem [resolvable:$true] %s15_s10 }
   0x4   :  { %s106_s11 = scalar_lea.vmem %s16_s10, 256  ;;  %p111_p1 = scmp.lt.s32.totalorder %s16_s10, %s16_s10 }
   0x5   :  { %p107_p0 = scmp.ne.s32.totalorder %s16_s10, %s106_s11  ;;  %p112_p2 = scmp.lt.s32.totalorder %s106_s11, %s106_s11 }
   0x7   :  { %p113_p3 = por %p112_p2, %p111_p1 }
   0x9   :  { %p114_p4 = pnand %p113_p3, %p107_p0 }
   0xb   :  { %117 = shalt.err (!%p114_p4)
}
   0xc   :  { %s165_s12 = smov 128   ;;  %s166_s13 = smov 8  }
   0xd   :  { %21 = dma.hbm_to_vmem [thread:$0]  %s193_s0, 256, %s16_s10, [#allocation3], %s165_s12, %s165_s12, %s166_s13  }
   0xe   :  { %s167_s16 = smov [#allocation5]  }
   0xf   :  { %s27_s17 = sshll.u32 %s167_s16, 4  ;;  %s28_s17 = int_to_ptr.vmem [resolvable:$true] %s27_s17 }
  0x10   :  { %s126_s18 = scalar_lea.vmem %s28_s17, 256  ;;  %p131_p6 = scmp.lt.s32.totalorder %s28_s17, %s28_s17 }
  0x11   :  { %p127_p5 = scmp.ne.s32.totalorder %s28_s17, %s126_s18  ;;  %p132_p7 = scmp.lt.s32.totalorder %s126_s18, %s126_s18 }
  0x13   :  { %p133_p8 = por %p132_p7, %p131_p6 }
  0x15   :  { %p134_p9 = pnand %p133_p8, %p127_p5 }
  0x17   :  { %137 = shalt.err (!%p134_p9)
}
  0x18   :  { %33 = dma.hbm_to_vmem [thread:$0]  %s194_s1, 256, %s28_s17, [#allocation6], %s165_s12, %s165_s12, %s166_s13  }
  0x19   :  { %158 = dma.done.wait [#allocation3], 256  }
  0x1a   :  { %159 = vsyncadd [#allocation3], 4294967040 }
  0x1b   :  { %160 = dma.done.wait [#allocation6], 256  }
  0x1c   :  { %161 = vsyncadd [#allocation6], 4294967040  ;;  %v45_v0 = vld [vmem:[#allocation2] sm:$0xff]  ;;  %v46_v1 = vld [vmem:[#allocation2 + $0x8] sm:$0xff]  ;;  %s168_s0 = smov [#allocation7]  }
  0x1d   :  { %v47_v2 = vld [vmem:[#allocation5] sm:$0xff]  ;;  %v48_v3 = vld [vmem:[#allocation5 + $0x8] sm:$0xff]  ;;  %v49_v4 = vmax.f32 %v45_v0, 0.0  ;;  %v50_v5 = vmax.f32 %v46_v1, 0.0  ;;  %s78_s1 = sshll.u32 %s168_s0, 4  ;;  %s79_s1 = int_to_ptr.vmem [resolvable:$true] %s78_s1 }
  0x1e   :  { %v51_v6 = vmax.f32 %v47_v2, 0.0  ;;  %v52_v7 = vmax.f32 %v48_v3, 0.0  ;;  %s138_s21 = scalar_lea.vmem %s79_s1, 128  ;;  %p143_p11 = scmp.lt.s32.totalorder %s79_s1, %s79_s1 }
  0x1f   :  { %v55_v8 = vadd.f32 1.0, %v49_v4  ;;  %v56_v9 = vadd.f32 1.0, %v50_v5  ;;  %p139_p10 = scmp.ne.s32.totalorder %s79_s1, %s138_s21  ;;  %p144_p12 = scmp.lt.s32.totalorder %s138_s21, %s138_s21 }
  0x20   :  { %v57_v10 = vadd.f32 1.0, %v51_v6  ;;  %v58_v11 = vadd.f32 1.0, %v52_v7  ;;  %v53_v14 = vsub.f32 %v49_v4, %v51_v6  ;;  %v54_v15 = vsub.f32 %v50_v5, %v52_v7 }
  0x21   :  { %p145_p13 = por %p144_p12, %p143_p11 }
  0x22   :  { %v59_v12 = vmul.f32 %v57_v10, %v55_v8  ;;  %v60_v13 = vmul.f32 %v58_v11, %v56_v9 }
  0x23   :  { %p146_p0 = pnand %p145_p13, %p139_p10 }
  0x24   :  { %94 = vrcp.f32 %v59_v12 }
  0x25   :  { %96 = vrcp.f32 %v60_v13 }
  0x31   :  { %v95_v16 = vpop.eup %94 }
  0x32   :  { %v97_v17 = vpop.eup %96  ;;  %v63_v18 = vmul.f32 %v95_v16, %v53_v14 }
  0x33   :  { %v64_v19 = vmul.f32 %v97_v17, %v54_v15 }
  0x34   :  { %v65_v20 = vmul.f32 %v63_v18, %v63_v18 }
  0x35   :  { %v66_v21 = vmul.f32 %v64_v19, %v64_v19 }
  0x37   :  { %v67_v22 = vadd.f32 %v66_v21, %v65_v20 }
  0x39   :  { %71 = vst [vmem:[#allocation7] sm:$0xff] %v67_v22 }
  0x3a   :  { %149 = shalt.err (!%p146_p0)
}
  0x3b   :  { %81 = dma.vmem_to_hbm [thread:$0]  %s79_s1, 128, %s195_s2, [#allocation4]  }
  0x3c   :  { %162 = dma.done.wait [#allocation4], 128  }
  0x3d   :  { %163 = vsyncadd [#allocation4], 4294967168 }
  0x3e   :  { %85 = vsyncpa [#allocation3], 1 }
  0x3f   :  { %86 = vsyncpa [#allocation6], 1 }
  0x40   :  { %87 = vsyncpa [#allocation4], 1 }

</bundles_post_ra>
